<compile_context>
chip_gen: v7x
topology: tpu7x:2x2x1
jax: 0.10.0
libtpu: 0.0.40
codegen_flags: <defaults>
</compile_context>

<pallas_src>
import functools

import jax
import jax.numpy as jnp
from jax.experimental import pallas as pl
from jax.experimental.pallas import tpu as pltpu


def _round_up(x, m):
    return (x + m - 1) // m * m


def _swiftformer_attn_kernel(x_ref, wq_ref, bq_ref, wk_ref, bk_ref,
                             wpf_ref, wf_ref, bpf_ref, o_ref, *, seq_len):
    bt, np_, d = x_ref.shape            # np_ = round_up(seq_len, 8) (block dim)
    f32, bf16 = jnp.float32, jnp.bfloat16

    # Reshape while still f32 (8-aligned second-minor dim -> layout preserving),
    # then cast once for the MXU.
    xb = x_ref[...].reshape(bt * np_, d).astype(bf16)          # [M, D] bf16

    # to_query / to_key (f32 accumulation on the MXU).
    q = jnp.dot(xb, wq_ref[...], preferred_element_type=f32) + bq_ref[...]
    k = jnp.dot(xb, wk_ref[...], preferred_element_type=f32) + bk_ref[...]

    # F.normalize(dim=-1): v / max(||v||, eps) == v * rsqrt(max(||v||^2, eps^2)).
    eps2 = 1e-24
    q = q * jax.lax.rsqrt(jnp.maximum(jnp.sum(q * q, axis=-1, keepdims=True), eps2))
    k = k * jax.lax.rsqrt(jnp.maximum(jnp.sum(k * k, axis=-1, keepdims=True), eps2))

    # In the HF forward the softmax is over a size-1 axis, so it is identically
    # 1 and w_g / the dim**-0.5 scale are dead:
    #   global_queries = per-batch sum over the sequence of q.
    q3 = q.reshape(bt, np_, d)
    if np_ != seq_len:
        # Mask garbage rows coming from the partial (OOB) seq block so they do
        # not leak into the per-batch reduction (where == select, so NaNs in
        # the garbage rows are dropped, not propagated).
        row = jax.lax.broadcasted_iota(jnp.int32, (np_, 1), 0)
        q3 = jnp.where(row < seq_len, q3, 0.0)
    gq = jnp.sum(q3, axis=1, keepdims=True)                    # [bt, 1, D] f32

    gk = (gq * k.reshape(bt, np_, d)).reshape(bt * np_, d)     # [M, D] f32

    # Fused proj+final (wpf = wp @ wf, bpf = bp @ wf + bf precomputed in the
    # wrapper): two independent K=D matmuls, no serial proj->final dependency.
    out = (jnp.dot(gk.astype(bf16), wpf_ref[...], preferred_element_type=f32)
           + jnp.dot(q.astype(bf16), wf_ref[...], preferred_element_type=f32)
           + bpf_ref[...])

    # Rows beyond seq_len / beyond the real batch are dropped by the masked
    # writeback of the partial output block.
    o_ref[...] = out.reshape(bt, np_, d).astype(o_ref.dtype)


def _tpu_profile():
    """Generation-conditioned VMEM budget / tiling knobs."""
    vmem_cap = None
    try:
        vmem_cap = int(getattr(pltpu.get_tpu_info(), "vmem_capacity_bytes", 0)) or None
    except Exception:
        vmem_cap = None
    kind = ""
    try:
        kind = jax.devices()[0].device_kind.lower()
    except Exception:
        pass
    small_vmem = ("7" in kind) or (vmem_cap is None) or (vmem_cap <= (64 << 20))
    if small_vmem:
        # v7x-class (64 MiB / TensorCore, 2 TCs) or unknown generation:
        # conservative budget and keep >=2 grid steps so the "parallel" axis
        # can shard across both TensorCores.
        return dict(vmem_limit=48 << 20, vmem_budget=36 << 20,
                    rows_cap=2048, force_multi_step=True)
    # v5e / v6e: single TensorCore, 128 MiB VMEM -> spend it on bigger tiles
    # and do not pointlessly split a batch that fits in one step.
    return dict(vmem_limit=100 << 20, vmem_budget=80 << 20,
                rows_cap=8192, force_multi_step=False)


def _choose_block_batch(batch, n_pad, d, *, rows_cap, vmem_budget, force_multi_step):
    """Batch elements folded per grid step.

    Rough per-step model: ~40 B per (row, D) element (f32 x/out blocks double-
    buffered + f32/bf16 intermediates) plus 16*D^2 B for double-buffered bf16
    weights; capped at rows_cap rows to stay pipeline-friendly.
    """
    fixed = 16 * d * d + (1 << 20)
    per_row = 40 * d
    max_rows = max(n_pad, (vmem_budget - fixed) // per_row)
    max_rows = min(max_rows, rows_cap)
    bt = max(1, min(batch, max_rows // n_pad))
    if force_multi_step and bt >= batch and batch > 1:
        bt = max(1, (batch + 1) // 2)   # >=2 grid steps (v7x dual TensorCore)
    return bt


def swiftformer_efficient_additive_attention(x, params):
    """x: [B, N, D] float32; params: dict of pre-transposed [in, out] weights."""
    B, N, D = x.shape
    Np = _round_up(N, 8)   # VMEM-block seq padding only; HBM stays unpadded
    prof = _tpu_profile()
    bt = _choose_block_batch(B, Np, D, rows_cap=prof["rows_cap"],
                             vmem_budget=prof["vmem_budget"],
                             force_multi_step=prof["force_multi_step"])
    grid = pl.cdiv(B, bt)

    bf16, f32 = jnp.bfloat16, jnp.float32
    wq = params["wq"].astype(bf16)
    bq = params["bq"].astype(f32)
    wk = params["wk"].astype(bf16)
    bk = params["bk"].astype(f32)
    # Algebraic proj+final fusion: out = (gq*k)@(wp@wf) + q@wf + (bp@wf + bf)
    wpf = (params["wp"] @ params["wf"]).astype(bf16)
    wf_ = params["wf"].astype(bf16)
    bpf = (params["bp"] @ params["wf"] + params["bf"]).astype(f32)
    # NOTE: params["wg"] and the dim**-0.5 scale are mathematically dead in the
    # HF forward (softmax over a size-1 axis == 1) and deliberately unused.

    kernel = functools.partial(_swiftformer_attn_kernel, seq_len=N)

    io_spec = pl.BlockSpec((bt, Np, D), lambda b: (b, 0, 0))
    mat_spec = pl.BlockSpec((D, D), lambda b: (0, 0))
    vec_spec = pl.BlockSpec((1, D), lambda b: (0, 0))

    out = pl.pallas_call(
        kernel,
        out_shape=jax.ShapeDtypeStruct((B, N, D), x.dtype),
        grid_spec=pltpu.PrefetchScalarGridSpec(
            num_scalar_prefetch=0,
            grid=(grid,),
            in_specs=[
                io_spec,               # x (unpadded in HBM; partial block)
                mat_spec, vec_spec,    # to_query  (wq, bq)
                mat_spec, vec_spec,    # to_key    (wk, bk)
                mat_spec,              # wp @ wf
                mat_spec,              # wf
                vec_spec,              # bp @ wf + bf
            ],
            out_specs=io_spec,
        ),
        compiler_params=pltpu.CompilerParams(
            dimension_semantics=("parallel",),
            vmem_limit_bytes=prof["vmem_limit"]),
    )(x, wq, bq, wk, bk, wpf, wf_, bpf)

    return out


def _reference_f32(x, params):
    """Plain-JAX full-f32 reproduction of the PyTorch forward."""
    D = x.shape[-1]
    eps = 1e-12
    q = x @ params["wq"] + params["bq"]
    k = x @ params["wk"] + params["bk"]
    q = q / jnp.maximum(jnp.linalg.norm(q, axis=-1, keepdims=True), eps)
    k = k / jnp.maximum(jnp.linalg.norm(k, axis=-1, keepdims=True), eps)
    qw = jnp.sum(q * params["wg"], axis=-1, keepdims=True)
    sqw = jax.nn.softmax(qw * (float(D) ** -0.5), axis=-1)   # size-1 -> ones
    gq = jnp.sum(sqw * q, axis=1, keepdims=True)
    out = (gq * k) @ params["wp"] + params["bp"] + q
    return out @ params["wf"] + params["bf"]


def _reference_matched(x, params):
    """Reference replicating the kernel's bf16/f32 precision and fusion."""
    bf16, f32 = jnp.bfloat16, jnp.float32
    xb = x.astype(bf16)
    q = jnp.dot(xb, params["wq"].astype(bf16), preferred_element_type=f32) + params["bq"]
    k = jnp.dot(xb, params["wk"].astype(bf16), preferred_element_type=f32) + params["bk"]
    q = q * jax.lax.rsqrt(jnp.maximum(jnp.sum(q * q, -1, keepdims=True), 1e-24))
    k = k * jax.lax.rsqrt(jnp.maximum(jnp.sum(k * k, -1, keepdims=True), 1e-24))
    gq = jnp.sum(q, axis=1, keepdims=True)
    wpf = (params["wp"] @ params["wf"]).astype(bf16)
    wf_ = params["wf"].astype(bf16)
    bpf = params["bp"] @ params["wf"] + params["bf"]
    return (jnp.dot((gq * k).astype(bf16), wpf, preferred_element_type=f32)
            + jnp.dot(q.astype(bf16), wf_, preferred_element_type=f32)
            + bpf)


def _init_params(key, dim):
    ks = jax.random.split(key, 9)
    f32 = jnp.float32
    s = 1.0 / (dim ** 0.5)
    return {
        # Linear weights stored pre-transposed: [in, out]
        "wq": jax.random.uniform(ks[0], (dim, dim), f32, -s, s),
        "bq": jax.random.uniform(ks[1], (1, dim), f32, -s, s),
        "wk": jax.random.uniform(ks[2], (dim, dim), f32, -s, s),
        "bk": jax.random.uniform(ks[3], (1, dim), f32, -s, s),
        # w_g ~ randn(dim, 1) in torch; stored as [1, dim] (dead in HF forward)
        "wg": jax.random.normal(ks[4], (1, dim), f32),
        "wp": jax.random.uniform(ks[5], (dim, dim), f32, -s, s),
        "bp": jax.random.uniform(ks[6], (1, dim), f32, -s, s),
        "wf": jax.random.uniform(ks[7], (dim, dim), f32, -s, s),
        "bf": jax.random.uniform(ks[8], (1, dim), f32, -s, s),
    }


if __name__ == "__main__":
    # batch=4, spatial 7x7 -> seq=49 (deliberately not 8/128-aligned), dim=32
    B, H, W, D = 4, 7, 7, 32
    N = H * W
    key = jax.random.PRNGKey(0)
    k_x, k_p = jax.random.split(key)
    x = jax.random.normal(k_x, (B, N, D), jnp.float32)
    params = _init_params(k_p, D)

    out = jax.block_until_ready(swiftformer_efficient_additive_attention(x, params))
    assert out.shape == (B, N, D)

    # Tight check against a reference using the kernel's exact precision/fusion.
    ref_m = _reference_matched(x, params)
    assert jnp.allclose(out, ref_m, atol=2e-3, rtol=2e-3), \
        "mismatch vs matched-precision reference"

    # Loose semantic check against the full-f32 PyTorch-faithful reference.
    ref_f = _reference_f32(x, params)
    assert jnp.allclose(out, ref_f, atol=1e-1, rtol=1e-1), \
        "mismatch vs f32 reference"

    print("KERNEL_OK")
</pallas_src>

<mosaic_0001>
module attributes {stable_mosaic.version = 11 : i64} {
  func.func @_swiftformer_attn_kernel(%arg0: i32, %arg1: memref<2x56x32xf32, #tpu.memory_space<vmem>>, %arg2: memref<32x32xbf16, #tpu.memory_space<vmem>>, %arg3: memref<1x32xf32, #tpu.memory_space<vmem>>, %arg4: memref<32x32xbf16, #tpu.memory_space<vmem>>, %arg5: memref<1x32xf32, #tpu.memory_space<vmem>>, %arg6: memref<32x32xbf16, #tpu.memory_space<vmem>>, %arg7: memref<32x32xbf16, #tpu.memory_space<vmem>>, %arg8: memref<1x32xf32, #tpu.memory_space<vmem>>, %arg9: memref<2x56x32xf32, #tpu.memory_space<vmem>>) attributes {dimension_semantics = [#tpu.dimension_semantics<parallel>], iteration_bounds = array<i64: 2>, scalar_prefetch = 0 : i64, scratch_operands = 0 : i64, tpu.core_type = #tpu.core_type<tc>, window_params = [{transform_indices = @transform_0, window_bounds = array<i64: 2, 56, 32>}, {pipeline_mode = #tpu.pipeline_mode<synchronous>, transform_indices = @transform_1, window_bounds = array<i64: 32, 32>}, {pipeline_mode = #tpu.pipeline_mode<synchronous>, transform_indices = @transform_2, window_bounds = array<i64: 1, 32>}, {pipeline_mode = #tpu.pipeline_mode<synchronous>, transform_indices = @transform_3, window_bounds = array<i64: 32, 32>}, {pipeline_mode = #tpu.pipeline_mode<synchronous>, transform_indices = @transform_4, window_bounds = array<i64: 1, 32>}, {pipeline_mode = #tpu.pipeline_mode<synchronous>, transform_indices = @transform_5, window_bounds = array<i64: 32, 32>}, {pipeline_mode = #tpu.pipeline_mode<synchronous>, transform_indices = @transform_6, window_bounds = array<i64: 32, 32>}, {pipeline_mode = #tpu.pipeline_mode<synchronous>, transform_indices = @transform_7, window_bounds = array<i64: 1, 32>}, {transform_indices = @transform_8, window_bounds = array<i64: 2, 56, 32>}]} {
    %c0 = arith.constant 0 : index
    %c0_0 = arith.constant 0 : index
    %c0_1 = arith.constant 0 : index
    %0 = vector.load %arg1[%c0, %c0_0, %c0_1] : memref<2x56x32xf32, #tpu.memory_space<vmem>>, vector<2x56x32xf32>
    %1 = vector.shape_cast %0 : vector<2x56x32xf32> to vector<112x32xf32>
    %2 = arith.truncf %1 : vector<112x32xf32> to vector<112x32xbf16>
    %c0_2 = arith.constant 0 : index
    %c0_3 = arith.constant 0 : index
    %3 = vector.load %arg2[%c0_2, %c0_3] : memref<32x32xbf16, #tpu.memory_space<vmem>>, vector<32x32xbf16>
    %cst = arith.constant dense<0.000000e+00> : vector<112x32xf32>
    %4 = tpu.matmul %2, %3, %cst {dimension_numbers = #tpu.dot_dimension_numbers<[1], [0], [0], [1], [0, 0, 1, 1], [], []>} : vector<112x32xbf16>, vector<32x32xbf16>, vector<112x32xf32> -> vector<112x32xf32>
    %c0_4 = arith.constant 0 : index
    %c0_5 = arith.constant 0 : index
    %5 = vector.load %arg3[%c0_4, %c0_5] : memref<1x32xf32, #tpu.memory_space<vmem>>, vector<1x32xf32>
    %6 = vector.broadcast %5 : vector<1x32xf32> to vector<112x32xf32>
    %7 = arith.addf %4, %6 : vector<112x32xf32>
    %c0_6 = arith.constant 0 : index
    %c0_7 = arith.constant 0 : index
    %8 = vector.load %arg4[%c0_6, %c0_7] : memref<32x32xbf16, #tpu.memory_space<vmem>>, vector<32x32xbf16>
    %cst_8 = arith.constant dense<0.000000e+00> : vector<112x32xf32>
    %9 = tpu.matmul %2, %8, %cst_8 {dimension_numbers = #tpu.dot_dimension_numbers<[1], [0], [0], [1], [0, 0, 1, 1], [], []>} : vector<112x32xbf16>, vector<32x32xbf16>, vector<112x32xf32> -> vector<112x32xf32>
    %c0_9 = arith.constant 0 : index
    %c0_10 = arith.constant 0 : index
    %10 = vector.load %arg5[%c0_9, %c0_10] : memref<1x32xf32, #tpu.memory_space<vmem>>, vector<1x32xf32>
    %11 = vector.broadcast %10 : vector<1x32xf32> to vector<112x32xf32>
    %12 = arith.addf %9, %11 : vector<112x32xf32>
    %13 = arith.mulf %7, %7 : vector<112x32xf32>
    %cst_11 = arith.constant dense<0.000000e+00> : vector<112xf32>
    %14 = vector.multi_reduction <add>, %13, %cst_11 [1] : vector<112x32xf32> to vector<112xf32>
    %15 = vector.shape_cast %14 : vector<112xf32> to vector<112x1xf32>
    %cst_12 = arith.constant 1.000000e-24 : f32
    %16 = vector.broadcast %cst_12 : f32 to vector<112x1xf32>
    %17 = arith.maximumf %15, %16 : vector<112x1xf32>
    %18 = math.rsqrt %17 : vector<112x1xf32>
    %19 = vector.broadcast %18 : vector<112x1xf32> to vector<112x32xf32>
    %20 = arith.mulf %7, %19 : vector<112x32xf32>
    %21 = arith.mulf %12, %12 : vector<112x32xf32>
    %cst_13 = arith.constant dense<0.000000e+00> : vector<112xf32>
    %22 = vector.multi_reduction <add>, %21, %cst_13 [1] : vector<112x32xf32> to vector<112xf32>
    %23 = vector.shape_cast %22 : vector<112xf32> to vector<112x1xf32>
    %cst_14 = arith.constant 1.000000e-24 : f32
    %24 = vector.broadcast %cst_14 : f32 to vector<112x1xf32>
    %25 = arith.maximumf %23, %24 : vector<112x1xf32>
    %26 = math.rsqrt %25 : vector<112x1xf32>
    %27 = vector.broadcast %26 : vector<112x1xf32> to vector<112x32xf32>
    %28 = arith.mulf %12, %27 : vector<112x32xf32>
    %29 = vector.shape_cast %20 : vector<112x32xf32> to vector<2x56x32xf32>
    %30 = tpu.iota {dimensions = array<i32: 0>} : vector<56x1xi32>
    %c49_i32 = arith.constant 49 : i32
    %31 = vector.broadcast %c49_i32 : i32 to vector<56x1xi32>
    %32 = arith.cmpi slt, %30, %31 : vector<56x1xi32>
    %cst_15 = arith.constant 0.000000e+00 : f32
    %33 = vector.shape_cast %32 : vector<56x1xi1> to vector<1x56x1xi1>
    %34 = vector.broadcast %33 : vector<1x56x1xi1> to vector<2x56x32xi1>
    %35 = vector.broadcast %cst_15 : f32 to vector<2x56x32xf32>
    %36 = arith.select %34, %29, %35 : vector<2x56x32xi1>, vector<2x56x32xf32>
    %cst_16 = arith.constant dense<0.000000e+00> : vector<2x32xf32>
    %37 = vector.multi_reduction <add>, %36, %cst_16 [1] : vector<2x56x32xf32> to vector<2x32xf32>
    %38 = vector.shape_cast %37 : vector<2x32xf32> to vector<2x1x32xf32>
    %39 = vector.shape_cast %28 : vector<112x32xf32> to vector<2x56x32xf32>
    %40 = vector.broadcast %38 : vector<2x1x32xf32> to vector<2x56x32xf32>
    %41 = arith.mulf %40, %39 : vector<2x56x32xf32>
    %42 = vector.shape_cast %41 : vector<2x56x32xf32> to vector<112x32xf32>
    %43 = arith.truncf %42 : vector<112x32xf32> to vector<112x32xbf16>
    %c0_17 = arith.constant 0 : index
    %c0_18 = arith.constant 0 : index
    %44 = vector.load %arg6[%c0_17, %c0_18] : memref<32x32xbf16, #tpu.memory_space<vmem>>, vector<32x32xbf16>
    %cst_19 = arith.constant dense<0.000000e+00> : vector<112x32xf32>
    %45 = tpu.matmul %43, %44, %cst_19 {dimension_numbers = #tpu.dot_dimension_numbers<[1], [0], [0], [1], [0, 0, 1, 1], [], []>} : vector<112x32xbf16>, vector<32x32xbf16>, vector<112x32xf32> -> vector<112x32xf32>
    %46 = arith.truncf %20 : vector<112x32xf32> to vector<112x32xbf16>
    %c0_20 = arith.constant 0 : index
    %c0_21 = arith.constant 0 : index
    %47 = vector.load %arg7[%c0_20, %c0_21] : memref<32x32xbf16, #tpu.memory_space<vmem>>, vector<32x32xbf16>
    %cst_22 = arith.constant dense<0.000000e+00> : vector<112x32xf32>
    %48 = tpu.matmul %46, %47, %cst_22 {dimension_numbers = #tpu.dot_dimension_numbers<[1], [0], [0], [1], [0, 0, 1, 1], [], []>} : vector<112x32xbf16>, vector<32x32xbf16>, vector<112x32xf32> -> vector<112x32xf32>
    %49 = arith.addf %45, %48 : vector<112x32xf32>
    %c0_23 = arith.constant 0 : index
    %c0_24 = arith.constant 0 : index
    %50 = vector.load %arg8[%c0_23, %c0_24] : memref<1x32xf32, #tpu.memory_space<vmem>>, vector<1x32xf32>
    %51 = vector.broadcast %50 : vector<1x32xf32> to vector<112x32xf32>
    %52 = arith.addf %49, %51 : vector<112x32xf32>
    %53 = vector.shape_cast %52 : vector<112x32xf32> to vector<2x56x32xf32>
    %c0_25 = arith.constant 0 : index
    %c0_26 = arith.constant 0 : index
    %c0_27 = arith.constant 0 : index
    %54 = vector.load %arg9[%c0_25, %c0_26, %c0_27] : memref<2x56x32xf32, #tpu.memory_space<vmem>>, vector<2x56x32xf32>
    tpu.vector_store %arg9[%c0_25, %c0_26, %c0_27], %53 {strides = array<i32>} : memref<2x56x32xf32, #tpu.memory_space<vmem>>, vector<2x56x32xf32>,
    return
  }
  func.func @transform_0(%arg0: i32) -> (i32, i32, i32) {
    %c0_i32 = arith.constant 0 : i32
    %c0_i32_0 = arith.constant 0 : i32
    %c0_i32_1 = arith.constant 0 : i32
    return %arg0, %c0_i32, %c0_i32_0 : i32, i32, i32
  }
  func.func @transform_1(%arg0: i32) -> (i32, i32) {
    %c0_i32 = arith.constant 0 : i32
    %c0_i32_0 = arith.constant 0 : i32
    %c0_i32_1 = arith.constant 0 : i32
    return %c0_i32, %c0_i32_0 : i32, i32
  }
  func.func @transform_2(%arg0: i32) -> (i32, i32) {
    %c0_i32 = arith.constant 0 : i32
    %c0_i32_0 = arith.constant 0 : i32
    %c0_i32_1 = arith.constant 0 : i32
    return %c0_i32, %c0_i32_0 : i32, i32
  }
  func.func @transform_3(%arg0: i32) -> (i32, i32) {
    %c0_i32 = arith.constant 0 : i32
    %c0_i32_0 = arith.constant 0 : i32
    %c0_i32_1 = arith.constant 0 : i32
    return %c0_i32, %c0_i32_0 : i32, i32
  }
  func.func @transform_4(%arg0: i32) -> (i32, i32) {
    %c0_i32 = arith.constant 0 : i32
    %c0_i32_0 = arith.constant 0 : i32
    %c0_i32_1 = arith.constant 0 : i32
    return %c0_i32, %c0_i32_0 : i32, i32
  }
  func.func @transform_5(%arg0: i32) -> (i32, i32) {
    %c0_i32 = arith.constant 0 : i32
    %c0_i32_0 = arith.constant 0 : i32
    %c0_i32_1 = arith.constant 0 : i32
    return %c0_i32, %c0_i32_0 : i32, i32
  }
  func.func @transform_6(%arg0: i32) -> (i32, i32) {
    %c0_i32 = arith.constant 0 : i32
    %c0_i32_0 = arith.constant 0 : i32
    %c0_i32_1 = arith.constant 0 : i32
    return %c0_i32, %c0_i32_0 : i32, i32
  }
  func.func @transform_7(%arg0: i32) -> (i32, i32) {
    %c0_i32 = arith.constant 0 : i32
    %c0_i32_0 = arith.constant 0 : i32
    %c0_i32_1 = arith.constant 0 : i32
    return %c0_i32, %c0_i32_0 : i32, i32
  }
  func.func @transform_8(%arg0: i32) -> (i32, i32, i32) {
    %c0_i32 = arith.constant 0 : i32
    %c0_i32_0 = arith.constant 0 : i32
    %c0_i32_1 = arith.constant 0 : i32
    return %arg0, %c0_i32, %c0_i32_0 : i32, i32, i32
  }
}

</mosaic_0001>

<bundles_post_ra>
// kernel: tpu_custom_call.1
= control target key start
LH: loop header
LB: loop body
LE: loop exit
PB: predicated region body
PF: predicated region fallthrough
CT: control target
= control target key end

     0   :  { %s1576_s27 = smov 0   ;;  %s2041_s0 = inlined_call_operand.vmem [shape: f32[4,49,32], index: 0, kind: input, shape index: {}]   ;;  %s2042_s1 = inlined_call_operand.vmem [shape: bf16[32,32], index: 1, kind: input, shape index: {}]   ;;  %s2043_s2 = inlined_call_operand.vmem [shape: f32[1,32], index: 2, kind: input, shape index: {}]   ;;  %s2044_s3 = inlined_call_operand.vmem [shape: bf16[32,32], index: 3, kind: input, shape index: {}]   ;;  %s2045_s4 = inlined_call_operand.vmem [shape: f32[1,32], index: 4, kind: input, shape index: {}]   ;;  %s2046_s5 = inlined_call_operand.vmem [shape: bf16[32,32], index: 5, kind: input, shape index: {}]   ;;  %s2047_s6 = inlined_call_operand.vmem [shape: bf16[32,32], index: 6, kind: input, shape index: {}]   ;;  %s2048_s7 = inlined_call_operand.vmem [shape: f32[1,32], index: 7, kind: input, shape index: {}]   ;;  %s2049_s8 = inlined_call_operand.vmem [shape: f32[4,49,32], index: 8, kind: output, shape index: {}]  }
   0x1 LB: > { %s1232_s28 = sadd.s32 4294967295, %s1527_s27   ;;  %p1236_p0 = scmp.ge.s32.totalorder %s1527_s27, 1  ;;  %s1527_s27 = sphi %s1576_s27, %s18_s27  }
   0x2   : > { %p264_p1 = scmp.lt.s32.totalorder %s1527_s27, 3 }
   0x4   : > { %p265_p2 = pnand %p1236_p0, %p264_p1 }
   0x5   : > { %v1457_v0 = vld [vmem:[%s2042_s1] sm:$0xff] (!%p265_p2)   ;;  %v1529_v1 = vmov (!%p265_p2), 0.0   ;;  %v1458_v2 = vld [vmem:[%s2042_s1 + $0x8] sm:$0xff] (!%p265_p2)   ;;  %vm1530_vm0 = vmmov (!%p265_p2), 0   ;;  %s1237_s11 = sshll.u32 (!%p265_p2), %s1232_s28, 1  ;;  %vm359_vm1 = vcmask (!%p265_p2), 261120  }
   0x6   : > { %268 = sbr.rel (%p265_p2) target bundleno = 711 (0x2c7), region = 52  ;;  %1318 = vmatprep.subr.bf16.mxu0 (!%p265_p2), %v1529_v1  ;;  %1350 = vmatprep.subr.bf16.mxu1 (!%p265_p2), %v1529_v1  ;;  %p301_p3 = scmp.lt.s32.totalorder (!%p265_p2), %s1237_s11, 3  ;;  %v1459_v3 = vld [vmem:[%s2044_s3] sm:$0xff] (!%p265_p2)   ;;  %v1460_v4 = vld [vmem:[%s2044_s3 + $0x8] sm:$0xff] (!%p265_p2)  }
   0x7   : > { %1319 = vmatpush3.bf16.msra.mxu0 (!%p265_p2), %v1457_v0  ;;  %1322 = vmatprep.mubr.msk.bf16.mxu0 (!%p265_p2), %vm1530_vm0, %v1529_v1  ;;  %v1675_v26 = vld [vmem:[%s2043_s2] ss:$0 sm:$0xff] (!%p265_p2) }
   0x8   : > { %1320 = vmatprep.subr.bf16.mxu0 (!%p265_p2), %v1529_v1  ;;  %1354 = vmatprep.mubr.msk.bf16.mxu1 (!%p265_p2), %vm1530_vm0, %v1529_v1  ;;  %v1707_v54 = vld [vmem:[%s2045_s4] ss:$0 sm:$0xff] (!%p265_p2) }
   0x9   : > { %1351 = vmatpush3.bf16.msra.mxu1 (!%p265_p2), %v1459_v3 }
   0xa   : > { %1352 = vmatprep.subr.bf16.mxu1 (!%p265_p2), %v1529_v1 }
   0xb   : > { %1321 = vmatpush3.bf16.msra.mxu0 (!%p265_p2), %v1458_v2 }
   0xc   : > { %1382 = vmatprep.subr.bf16.mxu0 (!%p265_p2), %v1529_v1 }
   0xd   : > { %s2051_s11 = smov (!%p301_p3, %s1237_s11), 3  ;;  %1353 = vmatpush3.bf16.msra.mxu1 %v1460_v4 }
   0xe   : > { %s1446_s16 = smul.u32 56, %s2051_s11  ;;  %1414 = vmatprep.subr.bf16.mxu1 %v1529_v1 }
  0x10   : > { %s1613_s19 = scalar_lea.vmem %s2041_s0, %s1446_s16  ;;  %s1994_s17 = scalar_lea.vmem %s2049_s8, %s1446_s16 }
  0x11   : > { %v315_v5 = vld [vmem:[%s1613_s19] sm:$0xff]  ;;  %v316_v6 = vld [vmem:[%s1613_s19 + $0x8] sm:$0xff]  ;;  %v317_v8 = vld [vmem:[%s1613_s19 + $0x10] sm:$0xff] }
  0x12   : > { %v329_v7 = vpack.c.bf16 %v316_v6, %v315_v5  ;;  %v318_v9 = vld [vmem:[%s1613_s19 + $0x18] sm:$0xff]  ;;  %v319_v11 = vld [vmem:[%s1613_s19 + $0x20] sm:$0xff]  ;;  %v320_v12 = vld [vmem:[%s1613_s19 + $0x28] sm:$0xff] }
  0x13   : > { %v330_v10 = vpack.c.bf16 %v318_v9, %v317_v8  ;;  %v331_v13 = vpack.c.bf16 %v320_v12, %v319_v11  ;;  %v321_v14 = vld [vmem:[%s1613_s19 + $0x30] sm:$0xff]  ;;  %v322_v15 = vld [vmem:[%s1613_s19 + $0x38] sm:$0xff]  ;;  %v323_v17 = vld [vmem:[%s1613_s19 + $0x40] sm:$0xff] }
  0x14   : > { %1323 = vmatmul.mubr.msk.bf16.vlgmr.msra.gmra.mrb[0].mxu0 %vm359_vm1, %v329_v7  ;;  %1355 = vmatmul.mubr.msk.bf16.vlgmr.msra.gmra.mrb[0].mxu1 %vm359_vm1, %v329_v7  ;;  %v332_v16 = vpack.c.bf16 %v322_v15, %v321_v14  ;;  %v324_v18 = vld [vmem:[%s1613_s19 + $0x48] sm:$0xff]  ;;  %v325_v20 = vld [vmem:[%s1613_s19 + $0x50] sm:$0xff]  ;;  %v326_v21 = vld [vmem:[%s1613_s19 + $0x58] sm:$0xff] }
  0x15   : > { %1326 = vmatprep.mubr.msk.bf16.mxu0 %vm1530_vm0, %v1529_v1  ;;  %1358 = vmatprep.mubr.msk.bf16.mxu1 %vm1530_vm0, %v1529_v1  ;;  %v333_v19 = vpack.c.bf16 %v324_v18, %v323_v17  ;;  %v334_v22 = vpack.c.bf16 %v326_v21, %v325_v20  ;;  %v327_v23 = vld [vmem:[%s1613_s19 + $0x60] sm:$0xff]  ;;  %v328_v24 = vld [vmem:[%s1613_s19 + $0x68] sm:$0xff] }
  0x16   : > { %v335_v25 = vpack.c.bf16 %v328_v24, %v327_v23 }
  0x1c   : > { %1327 = vmatmul.mubr.msk.bf16.gmra.mrb[4].mxu0 %vm359_vm1, %v330_v10  ;;  %1359 = vmatmul.mubr.msk.bf16.gmra.mrb[4].mxu1 %vm359_vm1, %v330_v10 }
  0x1d   : > { %1330 = vmatprep.mubr.msk.bf16.mxu0 %vm1530_vm0, %v1529_v1  ;;  %1362 = vmatprep.mubr.msk.bf16.mxu1 %vm1530_vm0, %v1529_v1 }
  0x24   : > { %1331 = vmatmul.mubr.msk.bf16.gmra.mrb[8].mxu0 %vm359_vm1, %v331_v13  ;;  %1363 = vmatmul.mubr.msk.bf16.gmra.mrb[8].mxu1 %vm359_vm1, %v331_v13 }
  0x25   : > { %1334 = vmatprep.mubr.msk.bf16.mxu0 %vm1530_vm0, %v1529_v1  ;;  %1366 = vmatprep.mubr.msk.bf16.mxu1 %vm1530_vm0, %v1529_v1 }
  0x2c   : > { %1335 = vmatmul.mubr.msk.bf16.gmra.mrb[12].mxu0 %vm359_vm1, %v332_v16  ;;  %1367 = vmatmul.mubr.msk.bf16.gmra.mrb[12].mxu1 %vm359_vm1, %v332_v16 }
  0x2d   : > { %1338 = vmatprep.mubr.msk.bf16.mxu0 %vm1530_vm0, %v1529_v1  ;;  %1370 = vmatprep.mubr.msk.bf16.mxu1 %vm1530_vm0, %v1529_v1 }
  0x34   : > { %1339 = vmatmul.mubr.msk.bf16.gmra.mrb[16].mxu0 %vm359_vm1, %v333_v19  ;;  %1371 = vmatmul.mubr.msk.bf16.gmra.mrb[16].mxu1 %vm359_vm1, %v333_v19 }
  0x35   : > { %1342 = vmatprep.mubr.msk.bf16.mxu0 %vm1530_vm0, %v1529_v1  ;;  %1374 = vmatprep.mubr.msk.bf16.mxu1 %vm1530_vm0, %v1529_v1 }
  0x3c   : > { %1343 = vmatmul.mubr.msk.bf16.gmra.mrb[20].mxu0 %vm359_vm1, %v334_v22  ;;  %1375 = vmatmul.mubr.msk.bf16.gmra.mrb[20].mxu1 %vm359_vm1, %v334_v22 }
  0x3d   : > { %1346 = vmatprep.mubr.msk.bf16.mxu0 %vm1530_vm0, %v1529_v1  ;;  %1378 = vmatprep.mubr.msk.bf16.mxu1 %vm1530_vm0, %v1529_v1 }
  0x44   : > { %1347 = vmatmul.mubr.msk.bf16.gmra.mrb[24].mxu0 %vm359_vm1, %v335_v25  ;;  %1379 = vmatmul.mubr.msk.bf16.gmra.mrb[24].mxu1 %vm359_vm1, %v335_v25 }
  0x45   : > { %1386 = vmatprep.mubr.msk.bf16.mxu0 %vm1530_vm0, %v1529_v1  ;;  %1418 = vmatprep.mubr.msk.bf16.mxu1 %vm1530_vm0, %v1529_v1 }
  0xe7   : > { %v415_v27 = vpop.f32.mrb[0].mxu0  ;;  %v527_v28 = vpop.f32.mrb[0].mxu1 }
  0xe8   : > { %v1678_v29 = vadd.f32 %v1675_v26, %v415_v27  ;;  %v1324_v30 = vpop.f32.mrb[1].mxu0  ;;  %v1356_v31 = vpop.f32.mrb[1].mxu1  ;;  %v1716_v60 = vadd.f32 %v1707_v54, %v527_v28 }
  0xe9   : > { %v418_v32 = vpop.f32.mrb[2].mxu0  ;;  %v530_v33 = vpop.f32.mrb[2].mxu1  ;;  %v1461_v31 = vld [vmem:[%s2047_s6] sm:$0xff]  }
  0xea   : > { %v1681_v34 = vadd.f32 %v1675_v26, %v418_v32  ;;  %v1325_v35 = vpop.f32.mrb[3].mxu0  ;;  %v582_v36 = vmul.f32 %v1678_v29, %v1678_v29  ;;  %v1357_v37 = vpop.f32.mrb[3].mxu1  ;;  %v680_v7 = vmul.f32 %v1716_v60, %v1716_v60  ;;  %v1732_v9 = vadd.f32 %v1707_v54, %v530_v33  ;;  %1383 = vmatpush3.bf16.msra.mxu0 %v1461_v31 }
  0xeb   : > { %1384 = vmatprep.subr.bf16.mxu0 %v1529_v1 }
  0xec   : > { %v596_v38 = vsel %vm359_vm1, %v582_v36, 0.0  ;;  %v583_v39 = vmul.f32 %v1681_v34, %v1681_v34  ;;  %v694_v14 = vsel %vm359_vm1, %v680_v7, 0.0  ;;  %v681_v21 = vmul.f32 %v1732_v9, %v1732_v9 }
  0xed   : > { %597 = vadd.xlane.f32.xlu0 %v596_v38 }
  0xee   : > { %v599_v44 = vsel %vm359_vm1, %v583_v39, 0.0  ;;  %v697_v27 = vsel %vm359_vm1, %v681_v21, 0.0 }
  0xef   : > { %v423_v40 = vpop.f32.mrb[4].mxu0  ;;  %v1688_v41 = vpop.f32.mrb[4].mxu1 }
  0xf0   : > { %v1691_v42 = vadd.f32 %v1675_v26, %v423_v40  ;;  %v1328_v43 = vpop.f32.mrb[5].mxu0  ;;  %v1360_v45 = vpop.f32.mrb[5].mxu1  ;;  %v1794_v7 = vadd.f32 %v1707_v54, %v1688_v41 }
  0xf1   : > { %600 = vadd.xlane.f32.xlu0 %v599_v44  ;;  %v426_v46 = vpop.f32.mrb[6].mxu0  ;;  %v1694_v47 = vpop.f32.mrb[6].mxu1  ;;  %v1463_v44 = vld [vmem:[%s2047_s6 + $0x8] sm:$0xff]  }
  0xf2   : > { %v1697_v48 = vadd.f32 %v1675_v26, %v426_v46  ;;  %v1329_v49 = vpop.f32.mrb[7].mxu0  ;;  %v584_v50 = vmul.f32 %v1691_v42, %v1691_v42  ;;  %v1361_v51 = vpop.f32.mrb[7].mxu1  ;;  %1385 = vmatpush3.bf16.msra.mxu0 %v1463_v44 }
  0xf4   : > { %v602_v52 = vsel %vm359_vm1, %v584_v50, 0.0  ;;  %v585_v53 = vmul.f32 %v1697_v48, %v1697_v48  ;;  %v1462_v50 = vld [vmem:[%s2046_s5] sm:$0xff]  }
  0xf5   : > { %603 = vadd.xlane.f32.xlu1 %v602_v52  ;;  %1415 = vmatpush3.bf16.msra.mxu1 %v1462_v50 }
  0xf6   : > { %v605_v59 = vsel %vm359_vm1, %v585_v53, 0.0  ;;  %1416 = vmatprep.subr.bf16.mxu1 %v1529_v1 }
  0xf7   : > { %v431_v55 = vpop.f32.mrb[8].mxu0  ;;  %v1709_v56 = vpop.f32.mrb[8].mxu1 }
  0xf8   : > { %v1712_v57 = vadd.f32 %v1675_v26, %v431_v55  ;;  %v1332_v58 = vpop.f32.mrb[9].mxu0  ;;  %v1364_v61 = vpop.f32.mrb[9].mxu1 }
  0xf9   : > { %606 = vadd.xlane.f32.xlu1 %v605_v59  ;;  %v434_v62 = vpop.f32.mrb[10].mxu0  ;;  %v1718_v63 = vpop.f32.mrb[10].mxu1 }
  0xfa   : > { %v1721_v0 = vadd.f32 %v1675_v26, %v434_v62  ;;  %v1333_v2 = vpop.f32.mrb[11].mxu0  ;;  %v586_v3 = vmul.f32 %v1712_v57, %v1712_v57  ;;  %v1365_v4 = vpop.f32.mrb[11].mxu1 }
  0xfc   : > { %v608_v5 = vsel %vm359_vm1, %v586_v3, 0.0  ;;  %v587_v6 = vmul.f32 %v1721_v0, %v1721_v0 }
  0xfd   : > { %609 = vadd.xlane.f32.xlu0 %v608_v5 }
  0xfe   : > { %v611_v8 = vsel %vm359_vm1, %v587_v6, 0.0 }
  0xff   : > { %612 = vadd.xlane.f32.xlu1 %v611_v8  ;;  %v439_v10 = vpop.f32.mrb[12].mxu0  ;;  %v1734_v11 = vpop.f32.mrb[12].mxu1 }
 0x100   : > { %v1737_v12 = vadd.f32 %v1675_v26, %v439_v10  ;;  %v1336_v13 = vpop.f32.mrb[13].mxu0  ;;  %v1368_v15 = vpop.f32.mrb[13].mxu1 }
 0x101   : > { %v442_v16 = vpop.f32.mrb[14].mxu0  ;;  %v1740_v17 = vpop.f32.mrb[14].mxu1 }
 0x102   : > { %v1743_v18 = vadd.f32 %v1675_v26, %v442_v16  ;;  %v1337_v19 = vpop.f32.mrb[15].mxu0  ;;  %v588_v20 = vmul.f32 %v1737_v12, %v1737_v12  ;;  %v1369_v22 = vpop.f32.mrb[15].mxu1 }
 0x103   : > { %695 = vadd.xlane.f32.xlu1 %v694_v14 }
 0x104   : > { %v614_v23 = vsel %vm359_vm1, %v588_v20, 0.0  ;;  %v589_v24 = vmul.f32 %v1743_v18, %v1743_v18  ;;  %v682_v20 = vmul.f32 %v1794_v7, %v1794_v7 }
 0x105   : > { %615 = vadd.xlane.f32.xlu0 %v614_v23  ;;  %v1807_v23 = vadd.f32 %v1707_v54, %v1694_v47 }
 0x106   : > { %v617_v25 = vsel %vm359_vm1, %v589_v24, 0.0  ;;  %v700_v47 = vsel %vm359_vm1, %v682_v20, 0.0 }
 0x107   : > { %618 = vadd.xlane.f32.xlu1 %v617_v25  ;;  %v447_v28 = vpop.f32.mrb[16].mxu0  ;;  %v1754_v30 = vpop.f32.mrb[16].mxu1  ;;  %v1813_v25 = vadd.f32 %v1707_v54, %v1709_v56  ;;  %v683_v56 = vmul.f32 %v1807_v23, %v1807_v23 }
 0x108   : > { %v1760_v32 = vadd.f32 %v1675_v26, %v447_v28  ;;  %v1340_v33 = vpop.f32.mrb[17].mxu0  ;;  %v1372_v35 = vpop.f32.mrb[17].mxu1 }
 0x109   : > { %698 = vadd.xlane.f32.xlu0 %v697_v27  ;;  %v450_v36 = vpop.f32.mrb[18].mxu0  ;;  %v1762_v37 = vpop.f32.mrb[18].mxu1  ;;  %v1826_v35 = vadd.f32 %v1707_v54, %v1734_v11 }
 0x10a   : > { %v1765_v38 = vadd.f32 %v1675_v26, %v450_v36  ;;  %v1341_v39 = vpop.f32.mrb[19].mxu0  ;;  %v590_v40 = vmul.f32 %v1760_v32, %v1760_v32  ;;  %v1373_v43 = vpop.f32.mrb[19].mxu1  ;;  %v684_v36 = vmul.f32 %v1813_v25, %v1813_v25 }
 0x10b   : > { %v1842_v43 = vadd.f32 %v1707_v54, %v1754_v30  ;;  %v686_v44 = vmul.f32 %v1826_v35, %v1826_v35 }
 0x10c   : > { %v620_v45 = vsel %vm359_vm1, %v590_v40, 0.0  ;;  %v591_v46 = vmul.f32 %v1765_v38, %v1765_v38  ;;  %v703_v40 = vsel %vm359_vm1, %v683_v56, 0.0  ;;  %v706_v11 = vsel %vm359_vm1, %v684_v36, 0.0 }
 0x10d   : > { %621 = vadd.xlane.f32.xlu0 %v620_v45  ;;  %v712_v30 = vsel %vm359_vm1, %v686_v44, 0.0 }
 0x10e   : > { %v623_v49 = vsel %vm359_vm1, %v591_v46, 0.0 }
 0x10f   : > { %624 = vadd.xlane.f32.xlu1 %v623_v49  ;;  %v455_v51 = vpop.f32.mrb[20].mxu0  ;;  %v567_v52 = vpop.f32.mrb[20].mxu1  ;;  %v1464_v49 = vld [vmem:[%s2046_s5 + $0x8] sm:$0xff]  }
 0x110   : > { %v1781_v53 = vadd.f32 %v1675_v26, %v455_v51  ;;  %v1344_v55 = vpop.f32.mrb[21].mxu0  ;;  %v1376_v58 = vpop.f32.mrb[21].mxu1  ;;  %v1858_v50 = vadd.f32 %v1707_v54, %v567_v52  ;;  %v688_v51 = vmul.f32 %v1842_v43, %v1842_v43  ;;  %1417 = vmatpush3.bf16.msra.mxu1 %v1464_v49 }
 0x111   : > { %v458_v59 = vpop.f32.mrb[22].mxu0  ;;  %v570_v61 = vpop.f32.mrb[22].mxu1 }
 0x112   : > { %v1785_v62 = vadd.f32 %v1675_v26, %v458_v59  ;;  %v1345_v2 = vpop.f32.mrb[23].mxu0  ;;  %v592_v3 = vmul.f32 %v1781_v53, %v1781_v53  ;;  %v1377_v4 = vpop.f32.mrb[23].mxu1  ;;  %v1864_v55 = vadd.f32 %v1707_v54, %v570_v61  ;;  %v718_v59 = vsel %vm359_vm1, %v688_v51, 0.0 }
 0x113   : > { %v690_v52 = vmul.f32 %v1858_v50, %v1858_v50 }
 0x114   : > { %v626_v5 = vsel %vm359_vm1, %v592_v3, 0.0  ;;  %v593_v6 = vmul.f32 %v1785_v62, %v1785_v62  ;;  %v691_v61 = vmul.f32 %v1864_v55, %v1864_v55 }
 0x115   : > { %627 = vadd.xlane.f32.xlu0 %v626_v5  ;;  %v724_v5 = vsel %vm359_vm1, %v690_v52, 0.0 }
 0x116   : > { %v629_v8 = vsel %vm359_vm1, %v593_v6, 0.0 }
 0x117   : > { %630 = vadd.xlane.f32.xlu1 %v629_v8  ;;  %v463_v10 = vpop.f32.mrb[24].mxu0  ;;  %v575_v13 = vpop.f32.mrb[24].mxu1  ;;  %v727_v8 = vsel %vm359_vm1, %v691_v61, 0.0 }
 0x118   : > { %v1798_v14 = vadd.f32 %v1675_v26, %v463_v10  ;;  %v1348_v15 = vpop.f32.mrb[25].mxu0  ;;  %v1380_v16 = vpop.f32.mrb[25].mxu1  ;;  %v1870_v2 = vadd.f32 %v1707_v54, %v575_v13 }
 0x119   : > { %v466_v19 = vpop.f32.mrb[26].mxu0  ;;  %v578_v21 = vpop.f32.mrb[26].mxu1 }
 0x11a   : > { %v1803_v22 = vadd.f32 %v1675_v26, %v466_v19  ;;  %v1349_v41 = vpop.f32.mrb[27].mxu0  ;;  %v594_v24 = vmul.f32 %v1798_v14, %v1798_v14  ;;  %v1381_v27 = vpop.f32.mrb[27].mxu1  ;;  %v1820_v26 = vadd.f32 %v1707_v54, %v1718_v63  ;;  %v1834_v63 = vadd.f32 %v1707_v54, %v1740_v17 }
 0x11b   : > { %v1849_v17 = vadd.f32 %v1707_v54, %v1762_v37  ;;  %v1876_v4 = vadd.f32 %v1707_v54, %v578_v21  ;;  %v692_v6 = vmul.f32 %v1870_v2, %v1870_v2 }
 0x11c   : > { %v632_v28 = vsel %vm359_vm1, %v594_v24, 0.0  ;;  %v595_v31 = vmul.f32 %v1803_v22, %v1803_v22  ;;  %v685_v39 = vmul.f32 %v1820_v26, %v1820_v26  ;;  %v687_v46 = vmul.f32 %v1834_v63, %v1834_v63 }
 0x11d   : > { %633 = vadd.xlane.f32.xlu0 %v632_v28  ;;  %v689_v58 = vmul.f32 %v1849_v17, %v1849_v17  ;;  %v693_v10 = vmul.f32 %v1876_v4, %v1876_v4  ;;  %v730_v13 = vsel %vm359_vm1, %v692_v6, 0.0 }
 0x11e   : > { %v635_v33 = vsel %vm359_vm1, %v595_v31, 0.0  ;;  %v709_v45 = vsel %vm359_vm1, %v685_v39, 0.0  ;;  %v715_v37 = vsel %vm359_vm1, %v687_v46, 0.0 }
 0x11f   : > { %636 = vadd.xlane.f32.xlu1 %v635_v33  ;;  %v721_v3 = vsel %vm359_vm1, %v689_v58, 0.0  ;;  %v733_v54 = vsel %vm359_vm1, %v693_v10, 0.0 }
 0x121   : > { %701 = vadd.xlane.f32.xlu0 %v700_v47 }
 0x123   : > { %704 = vadd.xlane.f32.xlu1 %v703_v40 }
 0x125   : > { %707 = vadd.xlane.f32.xlu0 %v706_v11 }
 0x127   : > { %710 = vadd.xlane.f32.xlu1 %v709_v45 }
 0x129   : > { %713 = vadd.xlane.f32.xlu0 %v712_v30 }
 0x12b   : > { %716 = vadd.xlane.f32.xlu1 %v715_v37 }
 0x12d   : > { %719 = vadd.xlane.f32.xlu0 %v718_v59 }
 0x12f   : > { %722 = vadd.xlane.f32.xlu1 %v721_v3 }
 0x131   : > { %725 = vadd.xlane.f32.xlu0 %v724_v5 }
 0x133   : > { %728 = vadd.xlane.f32.xlu1 %v727_v8 }
 0x135   : > { %731 = vadd.xlane.f32.xlu0 %v730_v13 }
 0x137   : > { %734 = vadd.xlane.f32.xlu1 %v733_v54 }
 0x17a   : > { %v598_v15 = vpop.xlane.xlu0 %597 }
 0x17b   : > { %v638_v16 = vmax.f32 %v598_v15, 1e-24 }
 0x17d   : > { %1465 = vrsqrt.f32 %v638_v16 }
 0x17e   : > { %v601_v19 = vpop.xlane.xlu0 %600 }
 0x17f   : > { %v639_v20 = vmax.f32 %v601_v19, 1e-24 }
 0x181   : > { %1467 = vrsqrt.f32 %v639_v20 }
 0x182   : > { %v604_v21 = vpop.xlane.xlu1 %603 }
 0x183   : > { %v640_v41 = vmax.f32 %v604_v21, 1e-24 }
 0x185   : > { %1469 = vrsqrt.f32 %v640_v41 }
 0x186   : > { %v607_v24 = vpop.xlane.xlu1 %606 }
 0x187   : > { %v641_v27 = vmax.f32 %v607_v24, 1e-24  ;;  %v1466_v28 = vpop.eup %1465 }
 0x188   : > { %v666_v56 = vmul.f32 %v1466_v28, %v1678_v29  ;;  %v778_v29 = vlaneseq }
 0x189   : > { %1471 = vrsqrt.f32 %v641_v27 }
 0x18a   : > { %v610_v31 = vpop.xlane.xlu0 %609  ;;  %v821_v5 = vsel %vm359_vm1, %v666_v56, 0.0  ;;  %v779_v8 = vshrl.u32 %v778_v29, 7 }
 0x18b   : > { %v1468_v47 = vpop.eup %1467  ;;  %v642_v33 = vmax.f32 %v610_v31, 1e-24 }
 0x18c   : > { %v667_v36 = vmul.f32 %v1468_v47, %v1681_v34  ;;  %v613_v39 = vpop.xlane.xlu1 %612  ;;  %v1905_v21 = vadd.s32 48, %v779_v8 }
 0x18d   : > { %1473 = vrsqrt.f32 %v642_v33  ;;  %v643_v40 = vmax.f32 %v613_v39, 1e-24 }
 0x18e   : > { %v884_v11 = vpack.c.bf16 %v667_v36, %v666_v56  ;;  %v822_v58 = vsel %vm359_vm1, %v667_v36, 0.0  ;;  %vm792_vm2 = vcmp.lt.s32.totalorder %v1905_v21, 49 }
 0x18f   : > { %1475 = vrsqrt.f32 %v643_v40  ;;  %v1470_v44 = vpop.eup %1469  ;;  %v823_v10 = vadd.f32 %v822_v58, %v821_v5 }
 0x190   : > { %1387 = vmatmul.mubr.msk.bf16.vlgmr.msra.gmra.mrb[28].mxu0 %vm359_vm1, %v884_v11  ;;  %v696_v45 = vpop.xlane.xlu1 %695  ;;  %v668_v51 = vmul.f32 %v1470_v44, %v1691_v42 }
 0x191   : > { %1390 = vmatprep.mubr.msk.bf16.mxu0 %vm1530_vm0, %v1529_v1 }
 0x192   : > { %v616_v46 = vpop.xlane.xlu0 %615  ;;  %v824_v6 = vsel %vm359_vm1, %v668_v51, 0.0 }
 0x193   : > { %v1472_v49 = vpop.eup %1471  ;;  %v644_v30 = vmax.f32 %v616_v46, 1e-24  ;;  %v825_v54 = vadd.f32 %v824_v6, %v823_v10 }
 0x194   : > { %v619_v37 = vpop.xlane.xlu1 %618  ;;  %v669_v34 = vmul.f32 %v1472_v49, %v1697_v48 }
 0x195   : > { %1477 = vrsqrt.f32 %v644_v30  ;;  %v645_v59 = vmax.f32 %v619_v37, 1e-24 }
 0x196   : > { %v699_v52 = vpop.xlane.xlu0 %698  ;;  %v885_v3 = vpack.c.bf16 %v669_v34, %v668_v51  ;;  %v826_v48 = vsel %vm359_vm1, %v669_v34, 0.0 }
 0x197   : > { %v1474_v61 = vpop.eup %1473  ;;  %1479 = vrsqrt.f32 %v645_v59  ;;  %v827_v41 = vadd.f32 %v826_v48, %v825_v54  ;;  %v737_v33 = vmax.f32 %v699_v52, 1e-24 }
 0x198   : > { %1391 = vmatmul.mubr.msk.bf16.gmra.mrb[32].mxu0 %vm359_vm1, %v885_v3  ;;  %v670_v42 = vmul.f32 %v1474_v61, %v1712_v57  ;;  %v736_v57 = vmax.f32 %v696_v45, 1e-24 }
 0x199   : > { %v1476_v13 = vpop.eup %1475  ;;  %1394 = vmatprep.mubr.msk.bf16.mxu0 %vm1530_vm0, %v1529_v1 }
 0x19a   : > { %v622_v15 = vpop.xlane.xlu0 %621  ;;  %v671_v16 = vmul.f32 %v1476_v13, %v1721_v0  ;;  %v828_v20 = vsel %vm359_vm1, %v670_v42, 0.0 }
 0x19b   : > { %v646_v19 = vmax.f32 %v622_v15, 1e-24  ;;  %v829_v28 = vadd.f32 %v828_v20, %v827_v41 }
 0x19c   : > { %v625_v24 = vpop.xlane.xlu1 %624  ;;  %v886_v31 = vpack.c.bf16 %v671_v16, %v670_v42  ;;  %v830_v56 = vsel %vm359_vm1, %v671_v16, 0.0 }
 0x19d   : > { %1481 = vrsqrt.f32 %v646_v19  ;;  %v647_v27 = vmax.f32 %v625_v24, 1e-24  ;;  %v831_v39 = vadd.f32 %v830_v56, %v829_v28 }
 0x19f   : > { %v1478_v47 = vpop.eup %1477  ;;  %1483 = vrsqrt.f32 %v647_v27 }
 0x1a0   : > { %1395 = vmatmul.mubr.msk.bf16.gmra.mrb[36].mxu0 %vm359_vm1, %v886_v31  ;;  %v672_v0 = vmul.f32 %v1478_v47, %v1737_v12  ;;  %1485 = vrsqrt.f32 %v736_v57 }
 0x1a1   : > { %v1480_v36 = vpop.eup %1479  ;;  %1398 = vmatprep.mubr.msk.bf16.mxu0 %vm1530_vm0, %v1529_v1  ;;  %1487 = vrsqrt.f32 %v737_v33 }
 0x1a2   : > { %v628_v40 = vpop.xlane.xlu0 %627  ;;  %v673_v11 = vmul.f32 %v1480_v36, %v1743_v18  ;;  %v813_v44 = vsel %vm792_vm2, %v672_v0, 0.0 }
 0x1a3   : > { %v648_v45 = vmax.f32 %v628_v40, 1e-24  ;;  %v832_v46 = vsel %vm359_vm1, %v813_v44, 0.0 }
 0x1a4   : > { %v631_v49 = vpop.xlane.xlu1 %630  ;;  %v833_v30 = vadd.f32 %v832_v46, %v831_v39  ;;  %v887_v29 = vpack.c.bf16 %v673_v11, %v672_v0 }
 0x1a5   : > { %1489 = vrsqrt.f32 %v648_v45  ;;  %v649_v12 = vmax.f32 %v631_v49, 1e-24 }
 0x1a6   : > { %v834_v51 = vrot.slane %v833_v30, 4 }
 0x1a7   : > { %v1482_v37 = vpop.eup %1481  ;;  %1491 = vrsqrt.f32 %v649_v12 }
 0x1a8   : > { %v835_v34 = vadd.f32 %v834_v51, %v833_v30  ;;  %1399 = vmatmul.mubr.msk.bf16.gmra.mrb[40].mxu0 %vm359_vm1, %v887_v29  ;;  %v674_v18 = vmul.f32 %v1482_v37, %v1760_v32  ;;  %v840_v32 = vsel %vm359_vm1, %v673_v11, 0.0 }
 0x1a9   : > { %v1484_v58 = vpop.eup %1483  ;;  %1402 = vmatprep.mubr.msk.bf16.mxu0 %vm1530_vm0, %v1529_v1 }
 0x1aa   : > { %v836_v59 = vrot.slane %v835_v34, 2  ;;  %v634_v52 = vpop.xlane.xlu0 %633  ;;  %v675_v3 = vmul.f32 %v1484_v58, %v1765_v38  ;;  %v1486_v5 = vpop.eup %1485  ;;  %v841_v10 = vsel %vm359_vm1, %v674_v18, 0.0 }
 0x1ab   : > { %v650_v61 = vmax.f32 %v634_v52, 1e-24  ;;  %v1488_v42 = vpop.eup %1487  ;;  %v764_v19 = vmul.f32 %v1486_v5, %v1716_v60  ;;  %v842_v38 = vadd.f32 %v841_v10, %v840_v32 }
 0x1ac   : > { %v837_v6 = vadd.f32 %v836_v59, %v835_v34  ;;  %v637_v8 = vpop.xlane.xlu1 %636  ;;  %v888_v15 = vpack.c.bf16 %v675_v3, %v674_v18  ;;  %v765_v41 = vmul.f32 %v1488_v42, %v1732_v9  ;;  %v843_v27 = vsel %vm359_vm1, %v675_v3, 0.0 }
 0x1ad   : > { %1493 = vrsqrt.f32 %v650_v61  ;;  %v651_v13 = vmax.f32 %v637_v8, 1e-24  ;;  %v844_v36 = vadd.f32 %v843_v27, %v842_v38 }
 0x1ae   : > { %v838_v48 = vrot.slane %v837_v6, 1  ;;  %v702_v54 = vpop.xlane.xlu0 %701 }
 0x1af   : > { %v1490_v16 = vpop.eup %1489  ;;  %1495 = vrsqrt.f32 %v651_v13  ;;  %v738_v20 = vmax.f32 %v702_v54, 1e-24 }
 0x1b0   : > { %v1926_v24 = vadd.f32 %v838_v48, %v837_v6  ;;  %1403 = vmatmul.mubr.msk.bf16.gmra.mrb[44].mxu0 %vm359_vm1, %v888_v15  ;;  %v705_v57 = vpop.xlane.xlu1 %704  ;;  %v676_v28 = vmul.f32 %v1490_v16, %v1781_v53 }
 0x1b1   : > { %v1492_v31 = vpop.eup %1491  ;;  %1497 = vrsqrt.f32 %v738_v20  ;;  %v739_v47 = vmax.f32 %v705_v57, 1e-24  ;;  %1406 = vmatprep.mubr.msk.bf16.mxu0 %vm1530_vm0, %v1529_v1 }
 0x1b2   : > { %v708_v60 = vpop.xlane.xlu0 %707  ;;  %v859_v33 = vmul.f32 %v1926_v24, %v764_v19  ;;  %v860_v9 = vmul.f32 %v1926_v24, %v765_v41  ;;  %v677_v56 = vmul.f32 %v1492_v31, %v1785_v62  ;;  %v845_v0 = vsel %vm359_vm1, %v676_v28, 0.0 }
 0x1b3   : > { %1499 = vrsqrt.f32 %v739_v47  ;;  %v740_v39 = vmax.f32 %v708_v60, 1e-24  ;;  %v846_v44 = vadd.f32 %v845_v0, %v844_v36 }
 0x1b4   : > { %v711_v40 = vpop.xlane.xlu1 %710  ;;  %v873_v53 = vpack.c.bf16 %v860_v9, %v859_v33  ;;  %v847_v45 = vsel %vm359_vm1, %v677_v56, 0.0  ;;  %v889_v46 = vpack.c.bf16 %v677_v56, %v676_v28 }
 0x1b5   : > { %v741_v11 = vmax.f32 %v711_v40, 1e-24  ;;  %1501 = vrsqrt.f32 %v740_v39  ;;  %v848_v29 = vadd.f32 %v847_v45, %v846_v44 }
 0x1b6   : > { %1419 = vmatmul.mubr.msk.bf16.vlgmr.msra.gmra.mrb[28].mxu1 %vm359_vm1, %v873_v53  ;;  %v714_v30 = vpop.xlane.xlu0 %713 }
 0x1b7   : > { %v1494_v49 = vpop.eup %1493  ;;  %1503 = vrsqrt.f32 %v741_v11  ;;  %1422 = vmatprep.mubr.msk.bf16.mxu1 %vm1530_vm0, %v1529_v1  ;;  %v742_v37 = vmax.f32 %v714_v30, 1e-24 }
 0x1b8   : > { %1407 = vmatmul.mubr.msk.bf16.gmra.mrb[48].mxu0 %vm359_vm1, %v889_v46  ;;  %v717_v62 = vpop.xlane.xlu1 %716  ;;  %v678_v12 = vmul.f32 %v1494_v49, %v1798_v14 }
 0x1b9   : > { %v1496_v51 = vpop.eup %1495  ;;  %1410 = vmatprep.mubr.msk.bf16.mxu0 %vm1530_vm0, %v1529_v1  ;;  %v743_v59 = vmax.f32 %v717_v62, 1e-24  ;;  %1505 = vrsqrt.f32 %v742_v37 }
 0x1ba   : > { %v679_v34 = vmul.f32 %v1496_v51, %v1803_v22  ;;  %v849_v18 = vsel %vm359_vm1, %v678_v12, 0.0  ;;  %v720_v13 = vpop.xlane.xlu0 %719 }
 0x1bb   : > { %v1498_v58 = vpop.eup %1497  ;;  %v850_v52 = vadd.f32 %v849_v18, %v848_v29  ;;  %1507 = vrsqrt.f32 %v743_v59  ;;  %v744_v20 = vmax.f32 %v720_v13, 1e-24 }
 0x1bc   : > { %v820_v3 = vsel %vm792_vm2, %v679_v34, 0.0  ;;  %v766_v61 = vmul.f32 %v1498_v58, %v1794_v7  ;;  %v723_v6 = vpop.xlane.xlu1 %722  ;;  %v890_v10 = vpack.c.bf16 %v679_v34, %v678_v12 }
 0x1bd   : > { %v1500_v5 = vpop.eup %1499  ;;  %v851_v14 = vsel %vm359_vm1, %v820_v3, 0.0  ;;  %v745_v54 = vmax.f32 %v723_v6, 1e-24 }
 0x1be   : > { %v852_v8 = vadd.f32 %v851_v14, %v850_v52  ;;  %v767_v42 = vmul.f32 %v1500_v5, %v1807_v23  ;;  %v861_v21 = vmul.f32 %v1926_v24, %v766_v61  ;;  %v726_v31 = vpop.xlane.xlu0 %725 }
 0x1bf   : > { %v1502_v22 = vpop.eup %1501  ;;  %1509 = vrsqrt.f32 %v745_v54  ;;  %v746_v0 = vmax.f32 %v726_v31, 1e-24 }
 0x1c0   : > { %v853_v48 = vrot.slane %v852_v8, 4  ;;  %1411 = vmatmul.mubr.msk.bf16.gmra.mrb[52].mxu0 %vm359_vm1, %v890_v10  ;;  %v862_v32 = vmul.f32 %v1926_v24, %v767_v42  ;;  %v768_v23 = vmul.f32 %v1502_v22, %v1813_v25  ;;  %v729_v27 = vpop.xlane.xlu1 %728  ;;  %1511 = vrsqrt.f32 %v744_v20 }
 0x1c1   : > { %v1504_v7 = vpop.eup %1503  ;;  %v747_v33 = vmax.f32 %v729_v27, 1e-24 }
 0x1c2   : > { %v854_v15 = vadd.f32 %v853_v48, %v852_v8  ;;  %v874_v16 = vpack.c.bf16 %v862_v32, %v861_v21  ;;  %v769_v19 = vmul.f32 %v1504_v7, %v1820_v26  ;;  %v863_v26 = vmul.f32 %v1926_v24, %v768_v23  ;;  %v732_v11 = vpop.xlane.xlu0 %731  ;;  %v1987_v23 = vld [vmem:[%s2048_s7] ss:$0 sm:$0xff] }
 0x1c3   : > { %v1506_v28 = vpop.eup %1505  ;;  %1513 = vrsqrt.f32 %v747_v33  ;;  %v748_v62 = vmax.f32 %v732_v11, 1e-24 }
 0x1c4   : > { %v855_v38 = vrot.slane %v854_v15, 2  ;;  %1423 = vmatmul.mubr.msk.bf16.gmra.mrb[32].mxu1 %vm359_vm1, %v874_v16  ;;  %v864_v57 = vmul.f32 %v1926_v24, %v769_v19  ;;  %v770_v25 = vmul.f32 %v1506_v28, %v1826_v35  ;;  %v735_v39 = vpop.xlane.xlu1 %734  ;;  %1515 = vrsqrt.f32 %v746_v0 }
 0x1c5   : > { %1426 = vmatprep.mubr.msk.bf16.mxu1 %vm1530_vm0, %v1529_v1  ;;  %v1508_v60 = vpop.eup %1507  ;;  %v749_v46 = vmax.f32 %v735_v39, 1e-24 }
 0x1c6   : > { %v856_v41 = vadd.f32 %v855_v38, %v854_v15  ;;  %v875_v56 = vpack.c.bf16 %v864_v57, %v863_v26  ;;  %v771_v36 = vmul.f32 %v1508_v60, %v1834_v63  ;;  %v865_v44 = vmul.f32 %v1926_v24, %v770_v25 }
 0x1c7   : > { %1517 = vrsqrt.f32 %v749_v46 }
 0x1c8   : > { %v857_v47 = vrot.slane %v856_v41, 1  ;;  %1519 = vrsqrt.f32 %v748_v62 }
 0x1c9   : > { %v1510_v53 = vpop.eup %1509 }
 0x1ca   : > { %v858_v9 = vadd.f32 %v857_v47, %v856_v41  ;;  %v1512_v45 = vpop.eup %1511  ;;  %v773_v30 = vmul.f32 %v1510_v53, %v1849_v17 }
 0x1cb   : > { %v772_v35 = vmul.f32 %v1512_v45, %v1842_v43 }
 0x1cc   : > { %1427 = vmatmul.mubr.msk.bf16.gmra.mrb[36].mxu1 %vm359_vm1, %v875_v56  ;;  %v866_v40 = vmul.f32 %v858_v9, %v771_v36  ;;  %v868_v12 = vmul.f32 %v858_v9, %v773_v30 }
 0x1cd   : > { %1430 = vmatprep.mubr.msk.bf16.mxu1 %vm1530_vm0, %v1529_v1  ;;  %v867_v63 = vmul.f32 %v858_v9, %v772_v35  ;;  %v1514_v51 = vpop.eup %1513 }
 0x1ce   : > { %v876_v49 = vpack.c.bf16 %v866_v40, %v865_v44  ;;  %v1516_v29 = vpop.eup %1515  ;;  %v775_v37 = vmul.f32 %v1514_v51, %v1864_v55 }
 0x1cf   : > { %v877_v24 = vpack.c.bf16 %v868_v12, %v867_v63  ;;  %v774_v17 = vmul.f32 %v1516_v29, %v1858_v50 }
 0x1d0   : > { %v870_v43 = vmul.f32 %v858_v9, %v775_v37 }
 0x1d1   : > { %v1518_v34 = vpop.eup %1517  ;;  %v869_v18 = vmul.f32 %v858_v9, %v774_v17 }
 0x1d2   : > { %v1520_v58 = vpop.eup %1519  ;;  %v777_v59 = vmul.f32 %v1518_v34, %v1876_v4 }
 0x1d3   : > { %v878_v52 = vpack.c.bf16 %v870_v43, %v869_v18  ;;  %v776_v3 = vmul.f32 %v1520_v58, %v1870_v2 }
 0x1d4   : > { %1431 = vmatmul.mubr.msk.bf16.gmra.mrb[40].mxu1 %vm359_vm1, %v876_v49  ;;  %v872_v55 = vmul.f32 %v858_v9, %v777_v59 }
 0x1d5   : > { %1434 = vmatprep.mubr.msk.bf16.mxu1 %vm1530_vm0, %v1529_v1  ;;  %v871_v61 = vmul.f32 %v858_v9, %v776_v3 }
 0x1d7   : > { %v879_v50 = vpack.c.bf16 %v872_v55, %v871_v61 }
 0x1dc   : > { %1435 = vmatmul.mubr.msk.bf16.gmra.mrb[44].mxu1 %vm359_vm1, %v877_v24 }
 0x1dd   : > { %1438 = vmatprep.mubr.msk.bf16.mxu1 %vm1530_vm0, %v1529_v1 }
 0x1e4   : > { %1439 = vmatmul.mubr.msk.bf16.gmra.mrb[48].mxu1 %vm359_vm1, %v878_v52 }
 0x1e5   : > { %1442 = vmatprep.mubr.msk.bf16.mxu1 %vm1530_vm0, %v1529_v1 }
 0x1ec   : > { %1443 = vmatmul.mubr.msk.bf16.gmra.mrb[52].mxu1 %vm359_vm1, %v879_v50 }
 0x263   : > { %v962_v5 = vpop.f32.mrb[28].mxu0 }
 0x264   : > { %v1388_v14 = vpop.f32.mrb[29].mxu0 }
 0x265   : > { %v965_v6 = vpop.f32.mrb[30].mxu0 }
 0x266   : > { %v1389_v8 = vpop.f32.mrb[31].mxu0 }
 0x26b   : > { %v970_v10 = vpop.f32.mrb[32].mxu0 }
 0x26c   : > { %v1392_v42 = vpop.f32.mrb[33].mxu0 }
 0x26d   : > { %v973_v4 = vpop.f32.mrb[34].mxu0 }
 0x26e   : > { %v1393_v22 = vpop.f32.mrb[35].mxu0 }
 0x273   : > { %v978_v13 = vpop.f32.mrb[36].mxu0 }
 0x274   : > { %v1396_v2 = vpop.f32.mrb[37].mxu0 }
 0x275   : > { %v981_v48 = vpop.f32.mrb[38].mxu0 }
 0x276   : > { %v1397_v21 = vpop.f32.mrb[39].mxu0 }
 0x27b   : > { %v986_v32 = vpop.f32.mrb[40].mxu0 }
 0x27c   : > { %v1400_v1 = vpop.f32.mrb[41].mxu0 }
 0x27d   : > { %v989_v7 = vpop.f32.mrb[42].mxu0 }
 0x27e   : > { %v1401_v54 = vpop.f32.mrb[43].mxu0 }
 0x283   : > { %v994_v15 = vpop.f32.mrb[44].mxu0 }
 0x284   : > { %v1404_v16 = vpop.f32.mrb[45].mxu0 }
 0x285   : > { %v997_v19 = vpop.f32.mrb[46].mxu0 }
 0x286   : > { %v1405_v20 = vpop.f32.mrb[47].mxu0 }
 0x289   : > { %v1084_v38 = vpop.f32.mrb[28].mxu1 }
 0x28a   : > { %v1085_v41 = vadd.f32 %v1084_v38, %v962_v5  ;;  %v1420_v27 = vpop.f32.mrb[29].mxu1 }
 0x28b   : > { %v1002_v57 = vpop.f32.mrb[48].mxu0  ;;  %v1087_v28 = vpop.f32.mrb[30].mxu1 }
 0x28c   : > { %v1146_v31 = vadd.f32 %v1987_v23, %v1085_v41  ;;  %v1088_v47 = vadd.f32 %v1087_v28, %v965_v6  ;;  %v1408_v26 = vpop.f32.mrb[49].mxu0  ;;  %v1421_v60 = vpop.f32.mrb[31].mxu1 }
 0x28d   : > { %v1005_v33 = vpop.f32.mrb[50].mxu0 }
 0x28e   : > { %1160 = vst.msk [vmem:[%s1994_s17] sm:$0xff] %vm359_vm1, %v1146_v31  ;;  %v1147_v9 = vadd.f32 %v1987_v23, %v1088_v47  ;;  %v1409_v56 = vpop.f32.mrb[51].mxu0 }
 0x290   : > { %1161 = vst.msk [vmem:[%s1994_s17 + $0x8] sm:$0xff] %vm359_vm1, %v1147_v9 }
 0x293   : > { %v1010_v0 = vpop.f32.mrb[52].mxu0 }
 0x294   : > { %v1412_v25 = vpop.f32.mrb[53].mxu0 }
 0x295   : > { %v1013_v36 = vpop.f32.mrb[54].mxu0 }
 0x296   : > { %v1413_v39 = vpop.f32.mrb[55].mxu0 }
 0x297   : > { %v1092_v40 = vpop.f32.mrb[32].mxu1 }
 0x298   : > { %v1093_v53 = vadd.f32 %v1092_v40, %v970_v10  ;;  %v1424_v11 = vpop.f32.mrb[33].mxu1 }
 0x299   : > { %v1095_v44 = vpop.f32.mrb[34].mxu1 }
 0x29a   : > { %v1148_v45 = vadd.f32 %v1987_v23, %v1093_v53  ;;  %v1096_v46 = vadd.f32 %v1095_v44, %v973_v4  ;;  %v1425_v49 = vpop.f32.mrb[35].mxu1 }
 0x29c   : > { %1162 = vst.msk [vmem:[%s1994_s17 + $0x10] sm:$0xff] %vm359_vm1, %v1148_v45  ;;  %v1149_v30 = vadd.f32 %v1987_v23, %v1096_v46 }
 0x29e   : > { %1163 = vst.msk [vmem:[%s1994_s17 + $0x18] sm:$0xff] %vm359_vm1, %v1149_v30 }
 0x29f   : > { %v1100_v62 = vpop.f32.mrb[36].mxu1 }
 0x2a0   : > { %v1101_v35 = vadd.f32 %v1100_v62, %v978_v13  ;;  %v1428_v63 = vpop.f32.mrb[37].mxu1 }
 0x2a1   : > { %v1103_v12 = vpop.f32.mrb[38].mxu1 }
 0x2a2   : > { %v1150_v51 = vadd.f32 %v1987_v23, %v1101_v35  ;;  %v1104_v29 = vadd.f32 %v1103_v12, %v981_v48  ;;  %v1429_v24 = vpop.f32.mrb[39].mxu1 }
 0x2a4   : > { %1164 = vst.msk [vmem:[%s1994_s17 + $0x20] sm:$0xff] %vm359_vm1, %v1150_v51  ;;  %v1151_v37 = vadd.f32 %v1987_v23, %v1104_v29 }
 0x2a6   : > { %1165 = vst.msk [vmem:[%s1994_s17 + $0x28] sm:$0xff] %vm359_vm1, %v1151_v37 }
 0x2a7   : > { %v1108_v17 = vpop.f32.mrb[40].mxu1 }
 0x2a8   : > { %v1109_v43 = vadd.f32 %v1108_v17, %v986_v32  ;;  %v1432_v34 = vpop.f32.mrb[41].mxu1 }
 0x2a9   : > { %v1111_v18 = vpop.f32.mrb[42].mxu1 }
 0x2aa   : > { %v1152_v58 = vadd.f32 %v1987_v23, %v1109_v43  ;;  %v1112_v59 = vadd.f32 %v1111_v18, %v989_v7  ;;  %v1433_v52 = vpop.f32.mrb[43].mxu1 }
 0x2ac   : > { %1166 = vst.msk [vmem:[%s1994_s17 + $0x30] sm:$0xff] %vm359_vm1, %v1152_v58  ;;  %v1153_v3 = vadd.f32 %v1987_v23, %v1112_v59 }
 0x2ae   : > { %1167 = vst.msk [vmem:[%s1994_s17 + $0x38] sm:$0xff] %vm359_vm1, %v1153_v3 }
 0x2af   : > { %v1116_v55 = vpop.f32.mrb[44].mxu1 }
 0x2b0   : > { %v1117_v61 = vadd.f32 %v1116_v55, %v994_v15  ;;  %v1436_v50 = vpop.f32.mrb[45].mxu1 }
 0x2b1   : > { %v1119_v5 = vpop.f32.mrb[46].mxu1 }
 0x2b2   : > { %v1154_v14 = vadd.f32 %v1987_v23, %v1117_v61  ;;  %v1120_v6 = vadd.f32 %v1119_v5, %v997_v19  ;;  %v1437_v8 = vpop.f32.mrb[47].mxu1 }
 0x2b4   : > { %1168 = vst.msk [vmem:[%s1994_s17 + $0x40] sm:$0xff] %vm359_vm1, %v1154_v14  ;;  %v1155_v10 = vadd.f32 %v1987_v23, %v1120_v6 }
 0x2b6   : > { %1169 = vst.msk [vmem:[%s1994_s17 + $0x48] sm:$0xff] %vm359_vm1, %v1155_v10 }
 0x2b7   : > { %v1124_v42 = vpop.f32.mrb[48].mxu1 }
 0x2b8   : > { %v1125_v4 = vadd.f32 %v1124_v42, %v1002_v57  ;;  %v1440_v22 = vpop.f32.mrb[49].mxu1 }
 0x2b9   : > { %v1127_v13 = vpop.f32.mrb[50].mxu1 }
 0x2ba   : > { %v1156_v2 = vadd.f32 %v1987_v23, %v1125_v4  ;;  %v1128_v48 = vadd.f32 %v1127_v13, %v1005_v33  ;;  %v1441_v21 = vpop.f32.mrb[51].mxu1 }
 0x2bc   : > { %1170 = vst.msk [vmem:[%s1994_s17 + $0x50] sm:$0xff] %vm359_vm1, %v1156_v2  ;;  %v1157_v32 = vadd.f32 %v1987_v23, %v1128_v48 }
 0x2be   : > { %1171 = vst.msk [vmem:[%s1994_s17 + $0x58] sm:$0xff] %vm359_vm1, %v1157_v32 }
 0x2bf   : > { %v1132_v1 = vpop.f32.mrb[52].mxu1 }
 0x2c0   : > { %v1133_v7 = vadd.f32 %v1132_v1, %v1010_v0  ;;  %v1444_v54 = vpop.f32.mrb[53].mxu1 }
 0x2c1   : > { %v1135_v15 = vpop.f32.mrb[54].mxu1 }
 0x2c2   : > { %v1158_v16 = vadd.f32 %v1987_v23, %v1133_v7  ;;  %v1136_v19 = vadd.f32 %v1135_v15, %v1013_v36  ;;  %v1445_v20 = vpop.f32.mrb[55].mxu1 }
 0x2c4   : > { %1172 = vst.msk [vmem:[%s1994_s17 + $0x60] sm:$0xff] %vm359_vm1, %v1158_v16  ;;  %v1159_v38 = vadd.f32 %v1987_v23, %v1136_v19 }
 0x2c6   : > { %1173 = vst.msk [vmem:[%s1994_s17 + $0x68] sm:$0xff] %vm359_vm1, %v1159_v38 }
 0x2c7 PF: > { %s18_s27 = sadd.s32 1, %s1527_s27  }
 0x2c8   : > { %p15_p4 = scmp.ge.s32.totalorder %s18_s27, 4  }
 0x2ca   :  { %17 = sbr.rel (!%p15_p4) target bundleno = 1 (0x1), region = 82 }

</bundles_post_ra>
